<compile_context>
chip_gen: v6e
topology: v6e:2x2x1
jax: 0.10.0
libtpu: 0.0.40
codegen_flags: <defaults>
</compile_context>

<pallas_src>
import functools

import jax
import jax.numpy as jnp
from jax.experimental import pallas as pl
from jax.experimental.pallas import tpu as pltpu


def _round_up(x: int, m: int) -> int:
    return (x + m - 1) // m * m


def _ce_tile_kernel(logits_ref, labels_ref, loss_ref, *, n_valid):
    # logits_ref: (TILE_N, C)  input dtype in VMEM
    # labels_ref: (TILE_N, 1)  int32      in VMEM
    # loss_ref:   (TILE_N, 1)  float32    in VMEM (per-example CE for this tile)
    pid = pl.program_id(0)

    logits = logits_ref[...].astype(jnp.float32)              # (TILE_N, C)
    labels = labels_ref[...]                                   # (TILE_N, 1)

    # numerically stable log-softmax pieces (no padding lanes: block = full C)
    row_max = jnp.max(logits, axis=-1, keepdims=True)          # (TILE_N, 1)
    shifted = logits - row_max                                  # (TILE_N, C)
    sum_exp = jnp.sum(jnp.exp(shifted), axis=-1, keepdims=True)

    # gather shifted logit at the label index via a one-hot compare
    col_ids = jax.lax.broadcasted_iota(jnp.int32, shifted.shape, 1)
    picked = jnp.sum(jnp.where(col_ids == labels, shifted, 0.0),
                     axis=-1, keepdims=True)                    # (TILE_N, 1)

    # CE = lse - logit[label] = log(sum_exp) - (logit[label] - row_max)
    per_example = jnp.log(sum_exp) - picked                     # (TILE_N, 1)

    # Mask rows beyond the valid batch (partial last block contains undefined
    # data).  Mask AFTER the per-row reductions so garbage rows can never
    # contaminate valid rows; the wrapper sum only sees the first N rows.
    tile_n = shifted.shape[0]
    row_ids = pid * tile_n + jax.lax.broadcasted_iota(jnp.int32, (tile_n, 1), 0)
    loss_ref[...] = jnp.where(row_ids < n_valid, per_example, 0.0)


def style_loss(emotion_cls: jax.Array, emotion_lab: jax.Array, *,
               vmem_tile_budget_bytes: int = 24 * 1024 * 1024,
               max_tile_rows: int | None = None,
               small_fallback_elems: int = 1 << 16) -> jax.Array:
    """Cross-entropy loss, mean over batch (nn.CrossEntropyLoss semantics).

    emotion_cls: [N, C] logits, any float dtype (upcast to f32 in-kernel)
    emotion_lab: [N] integer class indices in [0, C)
    """
    n, c = emotion_cls.shape

    # Tiny problems: pallas_call launch overhead dominates — use plain XLA.
    if n * c < small_fallback_elems:
        return style_loss_ref(emotion_cls, emotion_lab)

    dtype = emotion_cls.dtype
    itemsize = jnp.dtype(dtype).itemsize
    c_lane = _round_up(c, 128)  # lane-padded width of the VMEM buffers

    # Total per-row VMEM working set:
    #   double-buffered logits block        : 2 * c_lane * itemsize
    #   double-buffered labels block (int32): 2 * 128 * 4   (lane-padded)
    #   double-buffered per-example output  : 2 * 128 * 4   (lane-padded f32)
    #   f32 in-kernel intermediates (~4x)   : 4 * c_lane * 4
    per_row_bytes = (2 * c_lane * itemsize
                     + 2 * 128 * 4
                     + 2 * 128 * 4
                     + 4 * c_lane * 4)
    max_tile = max(8, (vmem_tile_budget_bytes // per_row_bytes) // 8 * 8)
    if max_tile_rows is not None:
        max_tile = max(8, min(max_tile, max_tile_rows))

    # Spread rows evenly over tiles (wastes < 8 rows instead of up to tile-1).
    num_tiles = pl.cdiv(n, max_tile)
    tile_n = _round_up(pl.cdiv(n, num_tiles), 8)
    grid_n = pl.cdiv(n, tile_n)

    labels = emotion_lab.astype(jnp.int32).reshape(n, 1)
    kernel = functools.partial(_ce_tile_kernel, n_valid=n)

    per_example = pl.pallas_call(
        kernel,
        out_shape=jax.ShapeDtypeStruct((n, 1), jnp.float32),
        grid=(grid_n,),
        in_specs=[
            pl.BlockSpec((tile_n, c), lambda i: (i, 0)),   # full class width
            pl.BlockSpec((tile_n, 1), lambda i: (i, 0)),
        ],
        out_specs=pl.BlockSpec((tile_n, 1), lambda i: (i, 0)),
        compiler_params=pltpu.CompilerParams(
            dimension_semantics=("parallel",),             # use both v7x TCs
            vmem_limit_bytes=48 * 1024 * 1024),
    )(emotion_cls, labels)

    # Final mean (tiny f32 reduction over N elements) in the wrapper.
    return jnp.sum(per_example) * jnp.float32(1.0 / n)


def style_loss_ref(emotion_cls, emotion_lab):
    """Pure-JAX reference matching nn.CrossEntropyLoss (mean reduction)."""
    logp = jax.nn.log_softmax(emotion_cls.astype(jnp.float32), axis=-1)
    picked = jnp.take_along_axis(
        logp, emotion_lab.reshape(-1, 1).astype(jnp.int32), axis=-1)
    return -jnp.mean(picked)


if __name__ == "__main__":
    key = jax.random.PRNGKey(0)
    k1, k2 = jax.random.split(key)

    # Small, intentionally unaligned shapes: 37 examples, 11 emotion classes
    # (exercises the partial last block and the non-128 class width).
    N, C = 37, 11
    emotion_cls = jax.random.normal(k1, (N, C), dtype=jnp.float32)   # logits
    emotion_lab = jax.random.randint(k2, (N,), 0, C, dtype=jnp.int32)

    # mimic the module's tuple-unpacking interface
    style_out = (None, emotion_cls)
    targets = (None, emotion_lab, None)
    _, cls = style_out
    _, lab, _ = targets

    ref = style_loss_ref(cls, lab)

    # Force the Pallas path at this toy size and cap the tile at 16 rows so
    # the multi-tile + partial-last-block code paths are exercised.
    loss = style_loss(cls, lab, max_tile_rows=16, small_fallback_elems=0)
    loss = jax.block_until_ready(loss)
    assert jnp.allclose(loss, ref, atol=1e-5, rtol=1e-5), (loss, ref)

    # Default auto path (falls back to pure XLA at this tiny size).
    loss_auto = jax.block_until_ready(style_loss(cls, lab))
    assert jnp.allclose(loss_auto, ref, atol=1e-5, rtol=1e-5), (loss_auto, ref)

    print("KERNEL_OK")
</pallas_src>

<mosaic_0001>
module attributes {stable_mosaic.version = 11 : i64} {
  func.func @_ce_tile_kernel(%arg0: i32, %arg1: memref<16x11xf32, #tpu.memory_space<vmem>>, %arg2: memref<16x1xi32, #tpu.memory_space<vmem>>, %arg3: memref<16x1xf32, #tpu.memory_space<vmem>>) attributes {dimension_semantics = [#tpu.dimension_semantics<parallel>], iteration_bounds = array<i64: 3>, scalar_prefetch = 0 : i64, scratch_operands = 0 : i64, tpu.core_type = #tpu.core_type<tc>, window_params = [{transform_indices = @transform_0, window_bounds = array<i64: 16, 11>}, {transform_indices = @transform_1, window_bounds = array<i64: 16, 1>}, {transform_indices = @transform_2, window_bounds = array<i64: 16, 1>}]} {
    %c0 = arith.constant 0 : index
    %c0_0 = arith.constant 0 : index
    %0 = vector.load %arg1[%c0, %c0_0] : memref<16x11xf32, #tpu.memory_space<vmem>>, vector<16x11xf32>
    %c0_1 = arith.constant 0 : index
    %c0_2 = arith.constant 0 : index
    %1 = vector.load %arg2[%c0_1, %c0_2] : memref<16x1xi32, #tpu.memory_space<vmem>>, vector<16x1xi32>
    %cst = arith.constant dense<0xFF800000> : vector<16xf32>
    %2 = vector.multi_reduction <maximumf>, %0, %cst [1] : vector<16x11xf32> to vector<16xf32>
    %3 = vector.shape_cast %2 : vector<16xf32> to vector<16x1xf32>
    %4 = vector.broadcast %3 : vector<16x1xf32> to vector<16x11xf32>
    %5 = arith.subf %0, %4 : vector<16x11xf32>
    %6 = math.exp %5 : vector<16x11xf32>
    %cst_3 = arith.constant dense<0.000000e+00> : vector<16xf32>
    %7 = vector.multi_reduction <add>, %6, %cst_3 [1] : vector<16x11xf32> to vector<16xf32>
    %8 = vector.shape_cast %7 : vector<16xf32> to vector<16x1xf32>
    %9 = tpu.iota {dimensions = array<i32: 1>} : vector<16x11xi32>
    %10 = vector.broadcast %1 : vector<16x1xi32> to vector<16x11xi32>
    %11 = arith.cmpi eq, %9, %10 : vector<16x11xi32>
    %cst_4 = arith.constant 0.000000e+00 : f32
    %12 = vector.broadcast %cst_4 : f32 to vector<16x11xf32>
    %13 = arith.select %11, %5, %12 : vector<16x11xi1>, vector<16x11xf32>
    %cst_5 = arith.constant dense<0.000000e+00> : vector<16xf32>
    %14 = vector.multi_reduction <add>, %13, %cst_5 [1] : vector<16x11xf32> to vector<16xf32>
    %15 = vector.shape_cast %14 : vector<16xf32> to vector<16x1xf32>
    %16 = math.log %8 : vector<16x1xf32>
    %17 = arith.subf %16, %15 : vector<16x1xf32>
    %c16_i32 = arith.constant 16 : i32
    %18 = arith.muli %arg0, %c16_i32 : i32
    %19 = tpu.iota {dimensions = array<i32: 0>} : vector<16x1xi32>
    %20 = vector.broadcast %18 : i32 to vector<16x1xi32>
    %21 = arith.addi %20, %19 : vector<16x1xi32>
    %c37_i32 = arith.constant 37 : i32
    %22 = vector.broadcast %c37_i32 : i32 to vector<16x1xi32>
    %23 = arith.cmpi slt, %21, %22 : vector<16x1xi32>
    %cst_6 = arith.constant 0.000000e+00 : f32
    %24 = vector.broadcast %cst_6 : f32 to vector<16x1xf32>
    %25 = arith.select %23, %17, %24 : vector<16x1xi1>, vector<16x1xf32>
    %c0_7 = arith.constant 0 : index
    %c0_8 = arith.constant 0 : index
    %26 = vector.load %arg3[%c0_7, %c0_8] : memref<16x1xf32, #tpu.memory_space<vmem>>, vector<16x1xf32>
    tpu.vector_store %arg3[%c0_7, %c0_8], %25 {strides = array<i32>} : memref<16x1xf32, #tpu.memory_space<vmem>>, vector<16x1xf32>,
    return
  }
  func.func @transform_0(%arg0: i32) -> (i32, i32) {
    %c0_i32 = arith.constant 0 : i32
    %c0_i32_0 = arith.constant 0 : i32
    return %arg0, %c0_i32 : i32, i32
  }
  func.func @transform_1(%arg0: i32) -> (i32, i32) {
    %c0_i32 = arith.constant 0 : i32
    %c0_i32_0 = arith.constant 0 : i32
    return %arg0, %c0_i32 : i32, i32
  }
  func.func @transform_2(%arg0: i32) -> (i32, i32) {
    %c0_i32 = arith.constant 0 : i32
    %c0_i32_0 = arith.constant 0 : i32
    return %arg0, %c0_i32 : i32, i32
  }
}

</mosaic_0001>

<bundles_post_ra>
// kernel: tpu_custom_call.1
= control target key start
LH: loop header
LB: loop body
LE: loop exit
PB: predicated region body
PF: predicated region fallthrough
CT: control target
= control target key end

     0   :  { %s733_s9 = smov 0   ;;  %s735_s10 = smov 0   ;;  %s825_s0 = inlined_call_operand.vmem [shape: f32[37,11], index: 0, kind: input, shape index: {}]   ;;  %s826_s1 = inlined_call_operand.vmem [shape: s32[37,1], index: 1, kind: input, shape index: {}]   ;;  %s827_s2 = inlined_call_operand.vmem [shape: f32[37,1], index: 2, kind: output, shape index: {}]  }
   0x1   :  { %s737_s11 = smov 0  }
   0x2 LB: > { %s746_s12 = sadd.s32 4294967295, %s683_s11   ;;  %s748_s13 = sadd.s32 1, %s683_s11   ;;  %s683_s11 = sphi %s737_s11, %s831_s11   ;;  %s679_s10 = sphi %s735_s10, %s830_s10   ;;  %s675_s9 = sphi %s733_s9, %s829_s9  }
   0x3   : > { %s68_s14 = ssub.s32 %s683_s11, %s748_s13  ;;  %s71_s15 = sadd.s32 1, %s679_s10 }
   0x4   : > { %p69_p0 = scmp.eq.s32.totalorder %s68_s14, 0  ;;  %p81_p1 = scmp.ne.s32.totalorder %s679_s10, %s675_s9 }
   0x5   : > { %p82_p2 = scmp.eq.s32.totalorder %s746_s12, 2  ;;  %p503_p3 = scmp.ge.s32.totalorder %s683_s11, 1 }
   0x6   : > { %s756_s16 = scalar_select %p69_p0, %s679_s10, %s71_s15  }
   0x7   : > { %p758_p4 = por %p82_p2, %p81_p1  ;;  %p140_p5 = scmp.lt.s32.totalorder %s683_s11, 4 }
   0x9   : > { %p141_p6 = pnand %p503_p3, %p140_p5 }
   0xa   : > { %s763_s18 = sshll.u32 (!%p141_p6), %s746_s12, 1  ;;  %s509_s27 = sshll.u32 (!%p141_p6), %s746_s12, 4 }
   0xb   : > { %144 = sbr.rel (%p141_p6) target bundleno = 380 (0x17c), region = 28  ;;  %p179_p7 = scmp.lt.s32.totalorder (!%p141_p6), %s763_s18, 4 }
   0xc   : > { %s171_s28 = sand.u32 (!%p141_p6), 1, %s675_s9  }
   0xd   : > { %s504_s29 = sshll.u32 (!%p141_p6), %s171_s28, 4 }
   0xe   : > { %s781_s30 = scalar_lea.vmem (!%p141_p6), [#allocation2], %s504_s29  }
  0x10   : > { %v717_v0 = vmov 0   ;;  %s180_s19 = scalar_select %p179_p7, %s763_s18, 4  ;;  %vm211_vm0 = vcmask 89088   ;;  %v230_v13 = vlaneseq  ;;  %v258_v28 = vstv %s509_s27 }
  0x11   : > { %619 = vset.pattern.permute.xlu1 %v717_v0  ;;  %620 = vset.pattern.permute.xlu0 %v717_v0  ;;  %vm265_vm4 = vcmask 7168   ;;  %s276_s3 = ssub.s32 (%p758_p4), 5, %s763_s18  ;;  %s791_s6 = scalar_lea.vmem (%p758_p4), %s827_s2, %s509_s27  }
  0x12   : > { %s506_s20 = sshll.u32 %s180_s19, 3  ;;  %v231_v15 = vand.u32 127, %v230_v13  ;;  %v256_v27 = vshrl.u32 %v230_v13, 7  ;;  %p277_p8 = scmp.lt.s32.totalorder (%p758_p4), %s276_s3, 2 }
  0x13   : > { %s182_s23 = scalar_lea.vmem %s825_s0, %s506_s20  ;;  %s196_s26 = scalar_lea.vmem %s826_s1, %s506_s20 }
  0x14   : > { %v207_v1 = vld [vmem:[%s182_s23] sm:$0xff]  ;;  %v208_v2 = vld [vmem:[%s182_s23 + $0x8] sm:$0xff]  ;;  %v259_v29 = vadd.s32 %v258_v28, %v256_v27  ;;  %v257_v30 = vadd.s32 8, %v256_v27 }
  0x15   : > { %v209_v3 = vld [vmem:[%s196_s26] sm:$0xff]  ;;  %v212_v4 = vsel %vm211_vm0, %v207_v1, -inf  ;;  %v210_v5 = vld [vmem:[%s196_s26 + $0x8] sm:$0xff]  ;;  %v215_v6 = vsel %vm211_vm0, %v208_v2, -inf }
  0x16   : > { %233 = vperm.xlu1 %619, %v209_v3   ;;  %213 = vmax.xlane.f32.xlu0 %v212_v4  ;;  %vm261_vm3 = vcmp.lt.s32.totalorder %v259_v29, 37  ;;  %v260_v34 = vadd.s32 %v258_v28, %v257_v30 }
  0x18   : > { %vm262_vm5 = vcmp.lt.s32.totalorder %v260_v34, 37 }
  0x1a   : > { %236 = vperm.xlu1 %619, %v210_v5   ;;  %216 = vmax.xlane.f32.xlu0 %v215_v6 }
  0x91   : > { %v234_v14 = vpop.permute.xlu1 %233 }
  0x92   : > { %vm238_vm1 = vcmp.eq.s32.totalorder %v231_v15, %v234_v14 }
  0x95   : > { %v237_v17 = vpop.permute.xlu1 %236 }
  0x96   : > { %vm239_vm2 = vcmp.eq.s32.totalorder %v231_v15, %v237_v17 }
  0x9f   : > { %v214_v7 = vpop.xlane.xlu0 %213 }
  0xa0   : > { %v218_v8 = vsub.f32 %v207_v1, %v214_v7 }
  0xa2   : > { %v220_v9 = vmul.f32 1.442695, %v218_v8  ;;  %v240_v19 = vsel %vm238_vm1, %v218_v8, 0.0 }
  0xa3   : > { %v217_v10 = vpop.xlane.xlu0 %216  ;;  %v242_v21 = vsel %vm211_vm0, %v240_v19, 0.0 }
  0xa4   : > { %621 = vpow2.f32 %v220_v9  ;;  %v219_v11 = vsub.f32 %v208_v2, %v217_v10 }
  0xa6   : > { %v222_v12 = vmul.f32 1.442695, %v219_v11  ;;  %v241_v23 = vsel %vm239_vm2, %v219_v11, 0.0 }
  0xa7   : > { %v245_v24 = vsel %vm211_vm0, %v241_v23, 0.0 }
  0xa8   : > { %623 = vpow2.f32 %v222_v12 }
  0xb1   : > { %v622_v16 = vpop.eup %621 }
  0xb2   : > { %v224_v18 = vsel %vm211_vm0, %v622_v16, 0.0 }
  0xb3   : > { %225 = vadd.xlane.f32.xlu0 %v224_v18 }
  0xb5   : > { %v624_v20 = vpop.eup %623 }
  0xb6   : > { %v227_v22 = vsel %vm211_vm0, %v624_v20, 0.0 }
  0xb7   : > { %243 = vadd.xlane.f32.xlu0 %v242_v21  ;;  %228 = vadd.xlane.f32.xlu1 %v227_v22 }
  0xbb   : > { %246 = vadd.xlane.f32.xlu0 %v245_v24 }
 0x13c   : > { %v226_v25 = vpop.xlane.xlu0 %225 }
 0x13d   : > { %625 = vlog2.f32 %v226_v25 }
 0x140   : > { %v229_v26 = vpop.xlane.xlu1 %228  ;;  %v244_v32 = vpop.xlane.xlu0 %243 }
 0x141   : > { %627 = vlog2.f32 %v229_v26 }
 0x144   : > { %v247_v39 = vpop.xlane.xlu0 %246 }
 0x14a   : > { %v626_v31 = vpop.eup %625 }
 0x14b   : > { %v249_v33 = vmul.f32 0.6931472, %v626_v31 }
 0x14d   : > { %v252_v35 = vsub.f32 %v249_v33, %v244_v32 }
 0x14e   : > { %v628_v36 = vpop.eup %627 }
 0x14f   : > { %v263_v37 = vsel %vm261_vm3, %v252_v35, 0.0  ;;  %v251_v38 = vmul.f32 0.6931472, %v628_v36 }
 0x150   : > { %266 = vst.msk [vmem:[%s781_s30] sm:$0xff] %vm265_vm4, %v263_v37  ;;  %274 = sbr.rel (!%p758_p4) target bundleno = 380 (0x17c), region = 32 }
 0x151   : > { %v253_v40 = vsub.f32 %v251_v38, %v247_v39 }
 0x153   : > { %v264_v41 = vsel %vm262_vm5, %v253_v40, 0.0 }
 0x154   : > { %267 = vst.msk [vmem:[%s781_s30 + $0x8] sm:$0xff] %vm265_vm4, %v264_v41 }
 0x155   : > { %s833_s3 = smov (!%p277_p8, %s276_s3), 2 }
 0x156   : > { %s512_s7 = sshll.u32 %s833_s3, 7 }
 0x157   : > { %p515_p9 = scmp.eq.s32.totalorder %s512_s7, 0 }
 0x158   : > { %s797_s8 = sshrl.u32 (!%p515_p9), %s833_s3, 1 }
 0x159   : > { %285 = sbr.rel (%p515_p9) target bundleno = 380 (0x17c), region = 36  ;;  %p516_p10 = scmp.le.s32.totalorder (!%p515_p9), %s797_s8, 0 }
 0x15e   : > { %450 = sbr.rel (%p516_p10) target bundleno = 363 (0x16b), region = 115  ;;  %s685_s9 = smov (!%p516_p10), %s791_s6  }
 0x15f   : > { %s689_s11 = smov (!%p516_p10), %s781_s30   ;;  %s693_s12 = smov (!%p516_p10), 0  }
 0x160   : > { %s697_s14 = smov (!%p516_p10), 0  }
 0x163 LB: >> { %v350_v42 = vld [vmem:[%s691_s11] sm:$0xff]  ;;  %v352_v43 = vld [vmem:[%s691_s11 + $0x8] sm:$0xff]  ;;  %s354_s15 = sadd.s32 1, %s695_s12  ;;  %s344_s14 = sadd.s32 1, %s699_s14   ;;  %s699_s14 = sphi %s697_s14, %s344_s14   ;;  %s695_s12 = sphi %s693_s12, %s694_s12   ;;  %s691_s11 = sphi %s689_s11, %s359_s11   ;;  %s687_s9 = sphi %s685_s9, %s360_s9  }
 0x164   : >> { %351 = vst [vmem:[%s687_s9] sm:$0xff] %v350_v42  ;;  %353 = vst [vmem:[%s687_s9 + $0x8] sm:$0xff] %v352_v43  ;;  %p355_p11 = scmp.ge.s32.totalorder %s354_s15, %s797_s8  ;;  %p343_p12 = scmp.ge.s32.totalorder %s344_s14, %s797_s8 }
 0x166   : >> { %s835_s15 = smov (%p355_p11, %s354_s15), 0  ;;  %346 = sbr.rel (!%p343_p12) target bundleno = 355 (0x163), region = 121 }
 0x167   : >> { %s517_s17 = sshll.u32 %s835_s15, 4  ;;  %s694_s12 = smov %s835_s15  }
 0x168   : >> { %s359_s11 = scalar_lea.vmem %s781_s30, %s517_s17 [#allocation2]   ;;  %s360_s9 = scalar_lea.vmem %s791_s6, %s517_s17  }
 0x16b PF: > { %s807_s18 = sand.u32 1, %s833_s3   ;;  %s528_s19 = sshll.u32 %s797_s8, 4 }
 0x16c   : > { %s365_s20 = scalar_lea.vmem %s781_s30, %s528_s19 [#allocation2]   ;;  %s367_s21 = scalar_lea.vmem %s791_s6, %s528_s19  }
 0x16d   : > { %p522_p13 = scmp.le.s32.totalorder %s807_s18, 0 }
 0x16e   : > { %s701_s22 = smov (!%p522_p13), %s367_s21   ;;  %s705_s23 = smov (!%p522_p13), %s365_s20  }
 0x16f   : > { %464 = sbr.rel (%p522_p13) target bundleno = 380 (0x17c), region = 126  ;;  %s709_s24 = smov (!%p522_p13), 0  }
 0x170   : > { %s713_s25 = smov (!%p522_p13), 0  }
 0x174 LB: >> { %v377_v44 = vld [vmem:[%s707_s23] sm:$0xff]  ;;  %s379_s26 = sadd.s32 1, %s711_s24  ;;  %s371_s25 = sadd.s32 1, %s715_s25   ;;  %s715_s25 = sphi %s713_s25, %s371_s25   ;;  %s711_s24 = sphi %s709_s24, %s710_s24   ;;  %s707_s23 = sphi %s705_s23, %s384_s23   ;;  %s703_s22 = sphi %s701_s22, %s385_s22  }
 0x175   : >> { %378 = vst [vmem:[%s703_s22] sm:$0xff] %v377_v44  ;;  %p380_p0 = scmp.ge.s32.totalorder %s379_s26, %s807_s18  ;;  %p370_p1 = scmp.ge.s32.totalorder %s371_s25, %s807_s18 }
 0x177   : >> { %s837_s26 = smov (%p380_p0, %s379_s26), 0  ;;  %373 = sbr.rel (!%p370_p1) target bundleno = 372 (0x174), region = 132 }
 0x178   : >> { %s523_s27 = sshll.u32 %s837_s26, 3  ;;  %s710_s24 = smov %s837_s26  }
 0x179   : >> { %s384_s23 = scalar_lea.vmem %s365_s20, %s523_s27 [#allocation2]   ;;  %s385_s22 = scalar_lea.vmem %s367_s21, %s523_s27  }
 0x17c PF: > { %p9_p2 = scmp.ge.s32.totalorder %s748_s13, 5   ;;  %s829_s9 = smov %s679_s10 }
 0x17d   : > { %s830_s10 = smov %s756_s16  ;;  %s831_s11 = smov %s748_s13 }
 0x17e   :  { %11 = sbr.rel (!%p9_p2) target bundleno = 2 (0x2), region = 143 }

</bundles_post_ra>
